<compile_context>
chip_gen: v5e
topology: v5e:2x2
jax: 0.10.0
libtpu: 0.0.40
codegen_flags: <defaults>
</compile_context>

<pallas_src>
import jax
import jax.numpy as jnp
from jax.experimental import pallas as pl
from jax.experimental.pallas import tpu as pltpu


def _constant_beta_kernel(value_ref, out_ref):
    # Single scalar SMEM -> SMEM copy; the scheduler ignores step/acc/loss.
    out_ref[0] = value_ref[0]


def _constant_beta_call(value_1d: jnp.ndarray) -> jnp.ndarray:
    """Runs the (trivial) Pallas kernel on a pre-converted (1,) f32 array."""
    out = pl.pallas_call(
        _constant_beta_kernel,
        out_shape=jax.ShapeDtypeStruct((1,), jnp.float32),
        in_specs=[pl.BlockSpec(memory_space=pltpu.SMEM)],   # beta value (scalar)
        out_specs=pl.BlockSpec(memory_space=pltpu.SMEM),
        input_output_aliases={0: 0},                         # reuse the 4-byte buffer
    )(value_1d)
    return out.reshape(())


class ConstantBetaScheduler:
    """Pallas/JAX equivalent of the PyTorch ConstantBetaScheduler module."""

    def __init__(self, value: float) -> None:
        # Hoisted once: device-resident (1,) float32 constant (== torch.as_tensor).
        self._value_1d = jnp.asarray(value, dtype=jnp.float32).reshape(1)
        self._call = jax.jit(_constant_beta_call)

    def __call__(self, step: int, acc: jnp.ndarray,
                 communication_loss: jnp.ndarray) -> jnp.ndarray:
        # `step`, `acc`, `communication_loss` are accepted to mirror the PyTorch
        # signature but never read (exactly like the reference module); they are
        # not handed to the kernel, so they generate zero DMA traffic.
        del step, acc, communication_loss
        return self._call(self._value_1d)


if __name__ == "__main__":
    key = jax.random.PRNGKey(0)
    k_acc, k_loss = jax.random.split(key)

    batch = 8
    beta_value = 0.25  # the module's __init__ value

    acc = jax.random.uniform(k_acc, (batch,), dtype=jnp.float32)
    communication_loss = jax.random.normal(k_loss, (batch,), dtype=jnp.float32)

    step = 7  # arbitrary; unused by the scheduler

    scheduler = ConstantBetaScheduler(beta_value)

    beta = scheduler(step, acc, communication_loss)
    beta = jax.block_until_ready(beta)

    # Call again to confirm the per-call path is safe to reuse (no donated-buffer issues).
    beta2 = jax.block_until_ready(scheduler(step + 1, acc, communication_loss))

    assert beta.shape == ()
    assert beta.dtype == jnp.float32
    assert float(beta) == float(beta_value)
    assert float(beta2) == float(beta_value)

    print("KERNEL_OK")
</pallas_src>

<mosaic_0001>
module attributes {stable_mosaic.version = 11 : i64} {
  func.func @_constant_beta_kernel(%arg0: memref<1xf32, #tpu.memory_space<smem>>, %arg1: memref<1xf32, #tpu.memory_space<smem>>) attributes {dimension_semantics = [], scalar_prefetch = 0 : i64, scratch_operands = 0 : i64, tpu.core_type = #tpu.core_type<tc>} {
    %c0 = arith.constant 0 : index
    %0 = memref.load %arg0[%c0] : memref<1xf32, #tpu.memory_space<smem>>
    %c0_0 = arith.constant 0 : index
    %1 = memref.load %arg1[%c0_0] : memref<1xf32, #tpu.memory_space<smem>>
    memref.store %0, %arg1[%c0_0] : memref<1xf32, #tpu.memory_space<smem>>
    return
  }
}

</mosaic_0001>

<bundles_post_ra>
// kernel: _constant_beta_call.1
= control target key start
LH: loop header
LB: loop body
LE: loop exit
PB: predicated region body
PF: predicated region fallthrough
CT: control target
= control target key end

     0   :  { %7 = vsyncpa [#allocation4], 0  ;;  %s43_s11 = smov [#allocation3]   ;;  %s60_s0 = inlined_call_operand.<no memory space> [shape: f32[1], index: 0, kind: input, shape index: {}, may-alias: {0,1}]   ;;  %s61_s1 = inlined_call_operand.hbm [shape: f32[1], index: 1, kind: output, shape index: {}, may-alias: {0,1}]  }
   0x1   :  { %12 = sst [smem:[#allocation3]] %s60_s0  ;;  %s18_s10 = sshll.u32 %s61_s1, 4  ;;  %s19_s10 = int_to_ptr.hbm [resolvable:$true] %s18_s10 }
   0x2   :  { %21 = dma.smem_to_hbm %s43_s11, 16, %s19_s10, [#allocation4]  }
   0x3   :  { %41 = dma.done.wait [#allocation4], 16  }
   0x4   :  { %42 = vsyncadd [#allocation4], 4294967280 }
   0x5   :  { %26 = sfence }
   0x6   :  { %27 = vsyncpa [#allocation4], 1 }

</bundles_post_ra>
